<compile_context>
chip_gen: v6e
topology: v6e:2x2x1
jax: 0.10.0
libtpu: 0.0.40
codegen_flags: <defaults>
</compile_context>

<pallas_src>
import jax
import jax.numpy as jnp
from jax.experimental import pallas as pl
from jax.experimental.pallas import tpu as pltpu


def _sbn_kernel(x_ref, scale_ref, shift_ref, o_ref):
    # x tile: (row_blk, col_blk) in native dtype; params: (row_blk, 1) f32.
    x = x_ref[...].astype(jnp.float32)                      # compute in f32 (v5e has no bf16 VALU)
    y = x * scale_ref[...] + shift_ref[...]                 # one broadcast FMA
    o_ref[...] = y.astype(o_ref.dtype)                      # cast back on store


def _largest_aligned_divisor(n, align, cap):
    """Largest divisor of n that is a multiple of `align` and <= cap (or None)."""
    cap = min(cap, n)
    d = (cap // align) * align
    while d >= align:
        if n % d == 0:
            return d
        d -= align
    return None


def _choose_blocks(rows, cols, itemsize, target_bytes=2 * 1024 * 1024):
    """Pick (row_blk, col_blk) obeying the (8,128) tiling rule with blocks of
    roughly `target_bytes` so the pipelined in+out working set fits every
    generation's default scoped VMEM."""
    max_elems = max(target_bytes // itemsize, 8 * 128)

    # Lane axis: prefer full cols (lane-dense). Only split if it's 128-aligned
    # and even 8 full rows would blow the budget; otherwise split rows instead.
    if 8 * cols <= max_elems or cols % 128 != 0:
        col_blk = cols
    else:
        col_blk = _largest_aligned_divisor(cols, 128, max(max_elems // 8, 128)) or cols

    # Sublane axis: largest multiple-of-8 divisor of rows that fits the budget.
    if rows % 8 != 0:
        row_blk = rows
    else:
        row_blk = _largest_aligned_divisor(rows, 8, max(max_elems // col_blk, 8)) or rows

    return row_blk, col_blk


def spiking_batchnorm2d_forward(x, running_mean, running_var, weight, bias,
                                *, eps, first_step, alias_input=False):
    """Pallas TPU implementation of spiking_BatchNorm2d.forward.

    Output dtype == input dtype.  `first_step` may be a Python bool or a
    traced boolean scalar (single compiled kernel either way).
    """
    B, C, H, W = x.shape
    hw = H * W
    rows = B * C
    x2 = x.reshape(rows, hw)                                # native dtype, no copy pass

    # O(C) parameter folding in the wrapper (tiny, not the streaming input).
    inv_std = jax.lax.rsqrt(running_var.astype(jnp.float32) + jnp.float32(eps))
    scale = weight.astype(jnp.float32) * inv_std            # (C,)
    shift_first = bias.astype(jnp.float32) - running_mean.astype(jnp.float32) * scale
    shift = jnp.where(jnp.asarray(first_step, dtype=bool),
                      shift_first, jnp.zeros_like(shift_first))

    scale2 = jnp.tile(scale.reshape(C, 1), (B, 1))          # (B*C, 1)
    shift2 = jnp.tile(shift.reshape(C, 1), (B, 1))          # (B*C, 1)

    row_blk, col_blk = _choose_blocks(rows, hw, x.dtype.itemsize)
    grid = (rows // row_blk, hw // col_blk)

    param_spec = pl.BlockSpec((row_blk, 1), lambda i, j: (i, 0))

    out = pl.pallas_call(
        _sbn_kernel,
        out_shape=jax.ShapeDtypeStruct((rows, hw), x.dtype),
        grid_spec=pltpu.PrefetchScalarGridSpec(
            num_scalar_prefetch=0,
            grid=grid,
            in_specs=[
                pl.BlockSpec((row_blk, col_blk), lambda i, j: (i, j)),  # x tile
                param_spec,                                             # scale
                param_spec,                                             # shift
            ],
            out_specs=pl.BlockSpec((row_blk, col_blk), lambda i, j: (i, j)),
        ),
        compiler_params=pltpu.CompilerParams(
            dimension_semantics=("parallel", "parallel")),
        # Elementwise, same shape/dtype -> x's HBM buffer can be reused for the
        # output.  Off by default so callers may keep x alive after the call.
        input_output_aliases={0: 0} if alias_input else {},
    )(x2, scale2, shift2)

    return out.reshape(B, C, H, W)


class SpikingBatchNorm2d:
    """Host-side stateful wrapper mirroring the PyTorch module's fire_time logic."""
    # TODO(synk): fire_time / reset() are Python-side module state (not tensor
    # ops), matching the source module: fire_time is decremented only on the
    # call where fire_time == level, and restored by reset().

    def __init__(self, running_mean, running_var, weight, bias, *, eps, level):
        self.level = level
        self.fire_time = level
        self.running_mean = running_mean
        self.running_var = running_var
        self.weight = weight
        self.bias = bias
        self.eps = eps

    def reset(self):
        self.fire_time = self.level

    def __call__(self, x):
        first = self.fire_time == self.level
        if first:
            self.fire_time -= 1
        return spiking_batchnorm2d_forward(
            x, self.running_mean, self.running_var, self.weight, self.bias,
            eps=self.eps, first_step=first)


def spiking_batchnorm2d_reference(x, mean, var, weight, bias, eps, first_step):
    """Pure-JAX mirror of the PyTorch forward for verification (f32 math)."""
    xf = x.astype(jnp.float32)
    m = mean.reshape(1, -1, 1, 1).astype(jnp.float32)
    v = var.reshape(1, -1, 1, 1).astype(jnp.float32)
    w = weight.reshape(1, -1, 1, 1).astype(jnp.float32)
    b = bias.reshape(1, -1, 1, 1).astype(jnp.float32)
    if first_step:
        return (xf - m) / jnp.sqrt(v + eps) * w + b
    return xf / jnp.sqrt(v + eps) * w


if __name__ == "__main__":
    # Small shapes consistent with a BatchNorm2d input: B=2, C=4, H=W=16.
    B, C, H, W = 2, 4, 16, 16
    eps = 1e-5
    level = 4

    key = jax.random.PRNGKey(0)
    kx, km, kv, kw, kb = jax.random.split(key, 5)
    x = jax.random.normal(kx, (B, C, H, W), dtype=jnp.float32)
    running_mean = jax.random.normal(km, (C,), dtype=jnp.float32)
    running_var = jax.random.uniform(kv, (C,), minval=0.5, maxval=2.0,
                                     dtype=jnp.float32)
    weight = jax.random.normal(kw, (C,), dtype=jnp.float32)
    bias = jax.random.normal(kb, (C,), dtype=jnp.float32)

    sbn = SpikingBatchNorm2d(running_mean, running_var, weight, bias,
                             eps=eps, level=level)

    out1 = jax.block_until_ready(sbn(x))   # first call: full BN (mean/bias applied)
    out2 = jax.block_until_ready(sbn(x))   # later calls: scale-only path

    ref1 = spiking_batchnorm2d_reference(x, running_mean, running_var, weight,
                                         bias, eps, True)
    ref2 = spiking_batchnorm2d_reference(x, running_mean, running_var, weight,
                                         bias, eps, False)

    assert out1.shape == (B, C, H, W) and out1.dtype == x.dtype
    assert out2.shape == (B, C, H, W) and out2.dtype == x.dtype
    assert jnp.max(jnp.abs(out1 - ref1)) < 1e-4, "first-step mismatch vs reference"
    assert jnp.max(jnp.abs(out2 - ref2)) < 1e-4, "later-step mismatch vs reference"

    # bf16 path: input dtype is preserved, math done in f32 inside the kernel.
    x_bf16 = x.astype(jnp.bfloat16)
    out_bf = jax.block_until_ready(
        spiking_batchnorm2d_forward(x_bf16, running_mean, running_var, weight,
                                    bias, eps=eps, first_step=True))
    ref_bf = spiking_batchnorm2d_reference(x_bf16, running_mean, running_var,
                                           weight, bias, eps, True)
    assert out_bf.dtype == jnp.bfloat16
    assert jnp.max(jnp.abs(out_bf.astype(jnp.float32) - ref_bf)) < 1e-1, \
        "bf16 path mismatch vs reference"

    print("KERNEL_OK")
</pallas_src>

<mosaic_0001>
module attributes {stable_mosaic.version = 11 : i64} {
  func.func @_sbn_kernel(%arg0: i32, %arg1: i32, %arg2: memref<8x256xf32, #tpu.memory_space<vmem>>, %arg3: memref<8x1xf32, #tpu.memory_space<vmem>>, %arg4: memref<8x1xf32, #tpu.memory_space<vmem>>, %arg5: memref<8x256xf32, #tpu.memory_space<vmem>>) attributes {dimension_semantics = [#tpu.dimension_semantics<parallel>, #tpu.dimension_semantics<parallel>], iteration_bounds = array<i64: 1, 1>, scalar_prefetch = 0 : i64, scratch_operands = 0 : i64, tpu.core_type = #tpu.core_type<tc>, window_params = [{transform_indices = @transform_0, window_bounds = array<i64: 8, 256>}, {transform_indices = @transform_1, window_bounds = array<i64: 8, 1>}, {transform_indices = @transform_2, window_bounds = array<i64: 8, 1>}, {transform_indices = @transform_3, window_bounds = array<i64: 8, 256>}]} {
    %c0 = arith.constant 0 : index
    %c0_0 = arith.constant 0 : index
    %0 = vector.load %arg2[%c0, %c0_0] : memref<8x256xf32, #tpu.memory_space<vmem>>, vector<8x256xf32>
    %c0_1 = arith.constant 0 : index
    %c0_2 = arith.constant 0 : index
    %1 = vector.load %arg3[%c0_1, %c0_2] : memref<8x1xf32, #tpu.memory_space<vmem>>, vector<8x1xf32>
    %2 = vector.broadcast %1 : vector<8x1xf32> to vector<8x256xf32>
    %3 = arith.mulf %0, %2 : vector<8x256xf32>
    %c0_3 = arith.constant 0 : index
    %c0_4 = arith.constant 0 : index
    %4 = vector.load %arg4[%c0_3, %c0_4] : memref<8x1xf32, #tpu.memory_space<vmem>>, vector<8x1xf32>
    %5 = vector.broadcast %4 : vector<8x1xf32> to vector<8x256xf32>
    %6 = arith.addf %3, %5 : vector<8x256xf32>
    %c0_5 = arith.constant 0 : index
    %c0_6 = arith.constant 0 : index
    %7 = vector.load %arg5[%c0_5, %c0_6] : memref<8x256xf32, #tpu.memory_space<vmem>>, vector<8x256xf32>
    tpu.vector_store %arg5[%c0_5, %c0_6], %6 {strides = array<i32>} : memref<8x256xf32, #tpu.memory_space<vmem>>, vector<8x256xf32>,
    return
  }
  func.func @transform_0(%arg0: i32, %arg1: i32) -> (i32, i32) {
    %c0_i32 = arith.constant 0 : i32
    return %arg0, %arg1 : i32, i32
  }
  func.func @transform_1(%arg0: i32, %arg1: i32) -> (i32, i32) {
    %c0_i32 = arith.constant 0 : i32
    %c0_i32_0 = arith.constant 0 : i32
    return %arg0, %c0_i32 : i32, i32
  }
  func.func @transform_2(%arg0: i32, %arg1: i32) -> (i32, i32) {
    %c0_i32 = arith.constant 0 : i32
    %c0_i32_0 = arith.constant 0 : i32
    return %arg0, %c0_i32 : i32, i32
  }
  func.func @transform_3(%arg0: i32, %arg1: i32) -> (i32, i32) {
    %c0_i32 = arith.constant 0 : i32
    return %arg0, %arg1 : i32, i32
  }
}

</mosaic_0001>

<bundles_post_ra>
// kernel: tpu_custom_call.1
= control target key start
LH: loop header
LB: loop body
LE: loop exit
PB: predicated region body
PF: predicated region fallthrough
CT: control target
= control target key end

     0   :  { %v74_v1 = vmov 0   ;;  %s111_s0 = inlined_call_operand.vmem [shape: f32[8,256], index: 0, kind: input, shape index: {}]   ;;  %s112_s1 = inlined_call_operand.vmem [shape: f32[8,1], index: 1, kind: input, shape index: {}]   ;;  %s113_s2 = inlined_call_operand.vmem [shape: f32[8,1], index: 2, kind: input, shape index: {}]   ;;  %s114_s3 = inlined_call_operand.hbm [shape: f32[8,256], index: 3, kind: output, shape index: {}]  }
   0x1   :  { %v17_v0 = vld [vmem:[%s112_s1] sm:$0xff]  ;;  %51 = vset.pattern.permute.xlu0 %v74_v1 }
   0x2   :  { %8 = vsyncpa [#allocation3], 0  ;;  %20 = vperm.xlu0 %51, %v17_v0   ;;  %v25_v2 = vld [vmem:[%s113_s2] sm:$0xff]  ;;  %v16_v5 = vld [vmem:[%s111_s0 + $0x8] sm:$0xff]  ;;  %s75_s20 = smov [#allocation2]  }
   0x3   :  { %v15_v4 = vld [vmem:[%s111_s0] sm:$0xff]  ;;  %s41_s1 = sshll.u32 %s75_s20, 4  ;;  %s42_s1 = int_to_ptr.vmem [resolvable:$true] %s41_s1 }
   0x4   :  { %s52_s2 = scalar_lea.vmem %s42_s1, 256  ;;  %p57_p1 = scmp.lt.s32.totalorder %s42_s1, %s42_s1 }
   0x5   :  { %p53_p0 = scmp.ne.s32.totalorder %s42_s1, %s52_s2  ;;  %p58_p2 = scmp.lt.s32.totalorder %s52_s2, %s52_s2 }
   0x6   :  { %28 = vperm.xlu0 %51, %v25_v2  }
   0x7   :  { %p59_p3 = por %p58_p2, %p57_p1 }
   0x9   :  { %p60_p4 = pnand %p59_p3, %p53_p0 }
  0x7d   :  { %v21_v3 = vpop.permute.xlu0 %20 }
  0x7e   :  { %v23_v6 = vmul.f32 %v21_v3, %v15_v4  ;;  %v24_v7 = vmul.f32 %v21_v3, %v16_v5 }
  0x81   :  { %v29_v8 = vpop.permute.xlu0 %28 }
  0x82   :  { %v31_v9 = vadd.f32 %v29_v8, %v23_v6  ;;  %v32_v10 = vadd.f32 %v29_v8, %v24_v7 }
  0x84   :  { %33 = vst [vmem:[#allocation2] sm:$0xff] %v31_v9  ;;  %34 = vst [vmem:[#allocation2 + $0x8] sm:$0xff] %v32_v10 }
  0x85   :  { %63 = shalt.err (!%p60_p4)
}
  0x86   :  { %44 = dma.vmem_to_hbm [thread:$0]  %s42_s1, 256, %s114_s3, [#allocation3]  }
  0x87   :  { %72 = dma.done.wait [#allocation3], 256  }
  0x88   :  { %73 = vsyncadd [#allocation3], 4294967040 }
  0x89   :  { %48 = vsyncpa [#allocation3], 1 }

</bundles_post_ra>
